<compile_context>
chip_gen: v7x
topology: tpu7x:2x2x1
jax: 0.10.0
libtpu: 0.0.40
codegen_flags: <defaults>
</compile_context>

<pallas_src>
import numpy as np
import jax
import jax.numpy as jnp
from jax.experimental import pallas as pl
from jax.experimental.pallas import tpu as pltpu


# ----------------------------- Pallas kernel -------------------------------

def _make_sum_kernel(n):
    """Weighted sum of n equally-shaped tiles: o = sum_i w[i] * x_i."""
    def kernel(*refs):
        w_ref = refs[0]            # (n,) f32 scalars in SMEM
        x_refs = refs[1:1 + n]     # n tiles of shape (TR, LW) in VMEM
        o_ref = refs[1 + n]        # (TR, LW) output tile
        acc = x_refs[0][...].astype(jnp.float32) * w_ref[0]
        for i in range(1, n):      # n is small & static -> unrolled adds
            acc = acc + x_refs[i][...].astype(jnp.float32) * w_ref[i]
        o_ref[...] = acc.astype(o_ref.dtype)
    return kernel


# ------------------------------ JAX wrapper ---------------------------------

def pallas_sum(xs, raw_w=None, *, lane_width=512, max_row_tile=256):
    """Pallas implementation of Sum.forward.

    xs    : list of n arrays, all with identical shape/dtype.
    raw_w : None (weight=False) or the (n-1,) learnable parameter `self.w`
            (weight=True); sigmoid(raw_w)*2 is applied like PyTorch.
    """
    n = len(xs)
    shape = xs[0].shape
    dtype = xs[0].dtype
    for x in xs:
        assert x.shape == shape and x.dtype == dtype, "all inputs must match"
    total = int(np.prod(shape))

    # Per-input scalar weights: x[0] always gets 1.0; the rest get
    # sigmoid(raw_w)*2 (weight=True) or 1.0 (weight=False).
    if raw_w is not None:
        w_tail = jax.nn.sigmoid(raw_w.astype(jnp.float32)) * 2.0
        w_full = jnp.concatenate([jnp.ones((1,), jnp.float32), w_tail])
    else:
        w_full = jnp.ones((n,), jnp.float32)

    # Lane-dense layout: view each tensor as (R, LW) with LW a multiple of 128
    # and R a multiple of 8; zero-padding the tail is harmless for a sum.
    LW = lane_width
    rows = -(-total // LW)           # ceil
    rows = -(-rows // 8) * 8         # round rows up to a multiple of 8
    TR = min(max_row_tile, rows)     # row tile (multiple of 8)
    R = -(-rows // TR) * TR          # total rows, divisible by TR
    padded = R * LW
    num_tiles = R // TR

    flat = []
    for x in xs:
        f = x.reshape(-1)
        if padded != total:
            f = jnp.pad(f, (0, padded - total))
        flat.append(f.reshape(R, LW))

    block = pl.BlockSpec((TR, LW), lambda i: (i, 0))
    out = pl.pallas_call(
        _make_sum_kernel(n),
        out_shape=jax.ShapeDtypeStruct((R, LW), dtype),
        grid=(num_tiles,),
        in_specs=[pl.BlockSpec(memory_space=pltpu.MemorySpace.SMEM)]  # weights
                 + [block] * n,                                       # inputs
        out_specs=block,
        compiler_params=pltpu.CompilerParams(
            dimension_semantics=("parallel",),
            vmem_limit_bytes=32 * 1024 * 1024),
    )(w_full, *flat)

    return out.reshape(-1)[:total].reshape(shape)


# -------------------------- pure-JAX reference ------------------------------

def reference_sum(xs, raw_w=None):
    y = xs[0]
    if raw_w is not None:
        w = jax.nn.sigmoid(raw_w) * 2.0
        for i in range(len(xs) - 1):
            y = y + xs[i + 1] * w[i]
    else:
        for i in range(len(xs) - 1):
            y = y + xs[i + 1]
    return y


# --------------------------------- main -------------------------------------

if __name__ == "__main__":
    key = jax.random.PRNGKey(0)
    n = 3
    N, C, H, W = 2, 4, 16, 16

    ks = jax.random.split(key, n)
    xs = [jax.random.normal(ks[i], (N, C, H, W), jnp.float32) for i in range(n)]

    # weight=True path: PyTorch init  self.w = -arange(1.0, n) / 2
    raw_w = -jnp.arange(1.0, n, dtype=jnp.float32) / 2.0

    out_weighted = jax.block_until_ready(pallas_sum(xs, raw_w))
    out_plain = jax.block_until_ready(pallas_sum(xs, None))

    ref_weighted = reference_sum(xs, raw_w)
    ref_plain = reference_sum(xs, None)

    np.testing.assert_allclose(np.asarray(out_weighted),
                               np.asarray(ref_weighted), rtol=1e-6, atol=1e-6)
    np.testing.assert_allclose(np.asarray(out_plain),
                               np.asarray(ref_plain), rtol=1e-6, atol=1e-6)
    print("KERNEL_OK")
</pallas_src>

<mosaic_0001>
module attributes {stable_mosaic.version = 11 : i64} {
  func.func @kernel(%arg0: i32, %arg1: memref<3xf32, #tpu.memory_space<smem>>, %arg2: memref<8x512xf32, #tpu.memory_space<vmem>>, %arg3: memref<8x512xf32, #tpu.memory_space<vmem>>, %arg4: memref<8x512xf32, #tpu.memory_space<vmem>>, %arg5: memref<8x512xf32, #tpu.memory_space<vmem>>) attributes {dimension_semantics = [#tpu.dimension_semantics<parallel>], iteration_bounds = array<i64: 1>, scalar_prefetch = 0 : i64, scratch_operands = 0 : i64, tpu.core_type = #tpu.core_type<tc>, window_params = [{transform_indices = @transform_0, window_bounds = array<i64: 3>}, {transform_indices = @transform_1, window_bounds = array<i64: 8, 512>}, {transform_indices = @transform_2, window_bounds = array<i64: 8, 512>}, {transform_indices = @transform_3, window_bounds = array<i64: 8, 512>}, {transform_indices = @transform_4, window_bounds = array<i64: 8, 512>}]} {
    %c0 = arith.constant 0 : index
    %c0_0 = arith.constant 0 : index
    %0 = vector.load %arg2[%c0, %c0_0] : memref<8x512xf32, #tpu.memory_space<vmem>>, vector<8x512xf32>
    %c0_1 = arith.constant 0 : index
    %1 = memref.load %arg1[%c0_1] : memref<3xf32, #tpu.memory_space<smem>>
    %2 = vector.broadcast %1 : f32 to vector<8x512xf32>
    %3 = arith.mulf %0, %2 : vector<8x512xf32>
    %c0_2 = arith.constant 0 : index
    %c0_3 = arith.constant 0 : index
    %4 = vector.load %arg3[%c0_2, %c0_3] : memref<8x512xf32, #tpu.memory_space<vmem>>, vector<8x512xf32>
    %c1 = arith.constant 1 : index
    %5 = memref.load %arg1[%c1] : memref<3xf32, #tpu.memory_space<smem>>
    %6 = vector.broadcast %5 : f32 to vector<8x512xf32>
    %7 = arith.mulf %4, %6 : vector<8x512xf32>
    %8 = arith.addf %3, %7 : vector<8x512xf32>
    %c0_4 = arith.constant 0 : index
    %c0_5 = arith.constant 0 : index
    %9 = vector.load %arg4[%c0_4, %c0_5] : memref<8x512xf32, #tpu.memory_space<vmem>>, vector<8x512xf32>
    %c2 = arith.constant 2 : index
    %10 = memref.load %arg1[%c2] : memref<3xf32, #tpu.memory_space<smem>>
    %11 = vector.broadcast %10 : f32 to vector<8x512xf32>
    %12 = arith.mulf %9, %11 : vector<8x512xf32>
    %13 = arith.addf %8, %12 : vector<8x512xf32>
    %c0_6 = arith.constant 0 : index
    %c0_7 = arith.constant 0 : index
    %14 = vector.load %arg5[%c0_6, %c0_7] : memref<8x512xf32, #tpu.memory_space<vmem>>, vector<8x512xf32>
    tpu.vector_store %arg5[%c0_6, %c0_7], %13 {strides = array<i32>} : memref<8x512xf32, #tpu.memory_space<vmem>>, vector<8x512xf32>,
    return
  }
  func.func @transform_0(%arg0: i32) -> i32 {
    %c0_i32 = arith.constant 0 : i32
    %c0_i32_0 = arith.constant 0 : i32
    return %c0_i32 : i32
  }
  func.func @transform_1(%arg0: i32) -> (i32, i32) {
    %c0_i32 = arith.constant 0 : i32
    %c0_i32_0 = arith.constant 0 : i32
    return %arg0, %c0_i32 : i32, i32
  }
  func.func @transform_2(%arg0: i32) -> (i32, i32) {
    %c0_i32 = arith.constant 0 : i32
    %c0_i32_0 = arith.constant 0 : i32
    return %arg0, %c0_i32 : i32, i32
  }
  func.func @transform_3(%arg0: i32) -> (i32, i32) {
    %c0_i32 = arith.constant 0 : i32
    %c0_i32_0 = arith.constant 0 : i32
    return %arg0, %c0_i32 : i32, i32
  }
  func.func @transform_4(%arg0: i32) -> (i32, i32) {
    %c0_i32 = arith.constant 0 : i32
    %c0_i32_0 = arith.constant 0 : i32
    return %arg0, %c0_i32 : i32, i32
  }
}

</mosaic_0001>

<bundles_post_ra>
// kernel: tpu_custom_call.1
= control target key start
LH: loop header
LB: loop body
LE: loop exit
PB: predicated region body
PF: predicated region fallthrough
CT: control target
= control target key end

     0   :  { %9 = vsyncpa [#allocation5], 0  ;;  %s326_s0 = inlined_call_operand.hbm [shape: f32[3], index: 0, kind: input, shape index: {}]   ;;  %s327_s1 = inlined_call_operand.hbm [shape: f32[8,512], index: 1, kind: input, shape index: {}]   ;;  %s328_s2 = inlined_call_operand.hbm [shape: f32[8,512], index: 2, kind: input, shape index: {}]   ;;  %s329_s3 = inlined_call_operand.hbm [shape: f32[8,512], index: 3, kind: input, shape index: {}]   ;;  %s330_s4 = inlined_call_operand.hbm [shape: f32[8,512], index: 4, kind: output, shape index: {}]  }
   0x1   :  { %10 = vsyncpa [#allocation3], 0 }
   0x2   :  { %11 = vsyncpa [#allocation8], 0 }
   0x3   :  { %12 = vsyncpa [#allocation4], 0  ;;  %s236_s15 = smov [#allocation7]   ;;  %s237_s17 = smov [#allocation6]  }
   0x4   :  { %s37_s16 = sshll.u32 %s236_s15, 4  ;;  %s27_s18 = sshll.u32 %s237_s17, 4  ;;  %s38_s16 = int_to_ptr.vmem [resolvable:$true] %s37_s16  ;;  %s28_s18 = int_to_ptr.vmem [resolvable:$true] %s27_s18 }
   0x5   :  { %s130_s21 = scalar_lea.hbm %s328_s2, 512 }
   0x6   :  { %p131_p0 = scmp.ne.s32.totalorder %s328_s2, %s130_s21  ;;  %p134_p1 = scmp.lt.u32.totalorder %s130_s21, %s328_s2 }
   0x8   :  { %p136_p2 = pnand %p134_p1, %p131_p0 }
   0xa   :  { %139 = shalt.err (!%p136_p2)
}
   0xb   :  { %s140_s26 = scalar_lea.vmem %s38_s16, 512  ;;  %p145_p4 = scmp.lt.s32.totalorder %s38_s16, %s38_s16 }
   0xc   :  { %p141_p3 = scmp.ne.s32.totalorder %s38_s16, %s140_s26  ;;  %p146_p5 = scmp.lt.s32.totalorder %s140_s26, %s140_s26 }
   0xe   :  { %p147_p6 = por %p146_p5, %p145_p4 }
  0x10   :  { %p148_p7 = pnand %p147_p6, %p141_p3 }
  0x12   :  { %151 = shalt.err (!%p148_p7)
}
  0x13   :  { %40 = dma.hbm_to_vmem [thread:$0]  %s328_s2, 512, %s38_s16, [#allocation8]  }
  0x14   :  { %s152_s5 = scalar_lea.hbm %s326_s0, 16 }
  0x15   :  { %p153_p8 = scmp.ne.s32.totalorder %s326_s0, %s152_s5  ;;  %p156_p9 = scmp.lt.u32.totalorder %s152_s5, %s326_s0 }
  0x17   :  { %p158_p10 = pnand %p156_p9, %p153_p8 }
  0x19   :  { %161 = shalt.err (!%p158_p10)
}
  0x1a   :  { %s238_s10 = smov [#allocation2]   ;;  %s162_s14 = scalar_lea.hbm %s327_s1, 512 }
  0x1b   :  { %20 = dma.hbm_to_smem %s326_s0, 16, %s238_s10, [#allocation5]  }
  0x1c   :  { %p163_p11 = scmp.ne.s32.totalorder %s327_s1, %s162_s14  ;;  %p166_p12 = scmp.lt.u32.totalorder %s162_s14, %s327_s1 }
  0x1e   :  { %p168_p13 = pnand %p166_p12, %p163_p11 }
  0x20   :  { %171 = shalt.err (!%p168_p13)
}
  0x21   :  { %s172_s20 = scalar_lea.vmem %s28_s18, 512  ;;  %p177_p1 = scmp.lt.s32.totalorder %s28_s18, %s28_s18 }
  0x22   :  { %p173_p0 = scmp.ne.s32.totalorder %s28_s18, %s172_s20  ;;  %p178_p2 = scmp.lt.s32.totalorder %s172_s20, %s172_s20 }
  0x24   :  { %p179_p3 = por %p178_p2, %p177_p1 }
  0x26   :  { %p180_p4 = pnand %p179_p3, %p173_p0 }
  0x28   :  { %183 = shalt.err (!%p180_p4)
}
  0x29   :  { %30 = dma.hbm_to_vmem [thread:$0]  %s327_s1, 512, %s28_s18, [#allocation3]  }
  0x2a   :  { %s239_s22 = smov [#allocation9]   ;;  %s184_s26 = scalar_lea.hbm %s329_s3, 512 }
  0x2b   :  { %s47_s23 = sshll.u32 %s239_s22, 4  ;;  %p185_p5 = scmp.ne.s32.totalorder %s329_s3, %s184_s26  ;;  %s48_s23 = int_to_ptr.vmem [resolvable:$true] %s47_s23 }
  0x2c   :  { %p188_p6 = scmp.lt.u32.totalorder %s184_s26, %s329_s3 }
  0x2e   :  { %p190_p7 = pnand %p188_p6, %p185_p5 }
  0x30   :  { %193 = shalt.err (!%p190_p7)
}
  0x31   :  { %s194_s5 = scalar_lea.vmem %s48_s23, 512  ;;  %p199_p9 = scmp.lt.s32.totalorder %s48_s23, %s48_s23 }
  0x32   :  { %p195_p8 = scmp.ne.s32.totalorder %s48_s23, %s194_s5  ;;  %p200_p10 = scmp.lt.s32.totalorder %s194_s5, %s194_s5 }
  0x34   :  { %p201_p11 = por %p200_p10, %p199_p9 }
  0x36   :  { %p202_p12 = pnand %p201_p11, %p195_p8 }
  0x38   :  { %205 = shalt.err (!%p202_p12)
}
  0x39   :  { %50 = dma.hbm_to_vmem [thread:$0]  %s329_s3, 512, %s48_s23, [#allocation8]  }
  0x3a   :  { %228 = dma.done.wait [#allocation5], 16  }
  0x3b   :  { %229 = vsyncadd [#allocation5], 4294967280 }
  0x3c   :  { %230 = dma.done.wait [#allocation3], 512  }
  0x3d   :  { %231 = vsyncadd [#allocation3], 4294966784 }
  0x3e   :  { %232 = dma.done.wait [#allocation8], 1024  }
  0x3f   :  { %233 = vsyncadd [#allocation8], 4294966272 }
  0x40   :  { %63 = sfence }
  0x41   :  { %s68_s6 = sld [smem:[#allocation2]]  ;;  %s123_s7 = sld [smem:[#allocation2 + $0x1]]  ;;  %v64_v0 = vld [vmem:[#allocation6] sm:$0xff]  ;;  %v65_v3 = vld [vmem:[#allocation6 + $0x8] sm:$0xff]  ;;  %v66_v6 = vld [vmem:[#allocation6 + $0x10] sm:$0xff] }
  0x42   :  { %s124_s8 = sld [smem:[#allocation2 + $0x2]]  ;;  %v74_v1 = vld [vmem:[#allocation7] sm:$0xff]  ;;  %v75_v4 = vld [vmem:[#allocation7 + $0x8] sm:$0xff]  ;;  %v76_v9 = vld [vmem:[#allocation7 + $0x10] sm:$0xff]  ;;  %s240_s3 = smov [#allocation10]  }
  0x43   :  { %v88_v2 = vld [vmem:[#allocation9] sm:$0xff]  ;;  %v89_v5 = vld [vmem:[#allocation9 + $0x8] sm:$0xff]  ;;  %v90_v10 = vld [vmem:[#allocation9 + $0x10] sm:$0xff]  ;;  %s112_s9 = sshll.u32 %s240_s3, 4  ;;  %s113_s9 = int_to_ptr.vmem [resolvable:$true] %s112_s9 }
  0x44   :  { %v67_v11 = vld [vmem:[#allocation6 + $0x18] sm:$0xff]  ;;  %s206_s10 = scalar_lea.vmem %s113_s9, 512  ;;  %p211_p0 = scmp.lt.s32.totalorder %s113_s9, %s113_s9 }
  0x45   :  { %v77_v16 = vld [vmem:[#allocation7 + $0x18] sm:$0xff]  ;;  %p207_p13 = scmp.ne.s32.totalorder %s113_s9, %s206_s10  ;;  %p212_p1 = scmp.lt.s32.totalorder %s206_s10, %s206_s10 }
  0x46   :  { %v91_v17 = vld [vmem:[#allocation9 + $0x18] sm:$0xff] }
  0x47   :  { %v69_v7 = vstv %s68_s6  ;;  %v79_v8 = vstv %s123_s7  ;;  %p213_p2 = por %p212_p1, %p211_p0 }
  0x48   :  { %v70_v12 = vmul.f32 %v69_v7, %v64_v0  ;;  %v80_v13 = vmul.f32 %v79_v8, %v74_v1  ;;  %v93_v14 = vstv %s124_s8  ;;  %v71_v15 = vmul.f32 %v69_v7, %v65_v3 }
  0x49   :  { %v94_v18 = vmul.f32 %v93_v14, %v88_v2  ;;  %v81_v19 = vmul.f32 %v79_v8, %v75_v4  ;;  %v95_v20 = vmul.f32 %v93_v14, %v89_v5  ;;  %v72_v21 = vmul.f32 %v69_v7, %v66_v6  ;;  %p214_p3 = pnand %p213_p2, %p207_p13 }
  0x4a   :  { %v84_v22 = vadd.f32 %v80_v13, %v70_v12  ;;  %v82_v23 = vmul.f32 %v79_v8, %v76_v9  ;;  %v96_v24 = vmul.f32 %v93_v14, %v90_v10  ;;  %v73_v25 = vmul.f32 %v69_v7, %v67_v11 }
  0x4b   :  { %v85_v26 = vadd.f32 %v81_v19, %v71_v15  ;;  %v83_v27 = vmul.f32 %v79_v8, %v77_v16  ;;  %v97_v28 = vmul.f32 %v93_v14, %v91_v17 }
  0x4c   :  { %v98_v29 = vadd.f32 %v94_v18, %v84_v22  ;;  %v86_v30 = vadd.f32 %v82_v23, %v72_v21 }
  0x4d   :  { %v99_v31 = vadd.f32 %v95_v20, %v85_v26  ;;  %v87_v32 = vadd.f32 %v83_v27, %v73_v25 }
  0x4e   :  { %102 = vst [vmem:[#allocation10] sm:$0xff] %v98_v29  ;;  %v100_v33 = vadd.f32 %v96_v24, %v86_v30 }
  0x4f   :  { %103 = vst [vmem:[#allocation10 + $0x8] sm:$0xff] %v99_v31  ;;  %v101_v34 = vadd.f32 %v97_v28, %v87_v32 }
  0x50   :  { %104 = vst [vmem:[#allocation10 + $0x10] sm:$0xff] %v100_v33 }
  0x51   :  { %105 = vst [vmem:[#allocation10 + $0x18] sm:$0xff] %v101_v34 }
  0x52   :  { %217 = shalt.err (!%p214_p3)
}
  0x53   :  { %s218_s2 = scalar_lea.hbm %s330_s4, 512 }
  0x54   :  { %p219_p4 = scmp.ne.s32.totalorder %s330_s4, %s218_s2  ;;  %p222_p5 = scmp.lt.u32.totalorder %s218_s2, %s330_s4 }
  0x56   :  { %p224_p6 = pnand %p222_p5, %p219_p4 }
  0x58   :  { %227 = shalt.err (!%p224_p6)
}
  0x59   :  { %115 = dma.vmem_to_hbm [thread:$0]  %s113_s9, 512, %s330_s4, [#allocation4]  }
  0x5a   :  { %234 = dma.done.wait [#allocation4], 512  }
  0x5b   :  { %235 = vsyncadd [#allocation4], 4294966784 }
  0x5c   :  { %119 = vsyncpa [#allocation3], 1 }
  0x5d   :  { %120 = vsyncpa [#allocation8], 1 }
  0x5e   :  { %121 = vsyncpa [#allocation4], 1 }
  0x5f   :  { %122 = vsyncpa [#allocation5], 1 }

</bundles_post_ra>
